<compile_context>
chip_gen: v7x
topology: tpu7x:2x2x1
jax: 0.10.0
libtpu: 0.0.40
codegen_flags: <defaults>
</compile_context>

<pallas_src>
import jax
import jax.numpy as jnp
from jax.experimental import pallas as pl
from jax.experimental.pallas import tpu as pltpu

POLY_DEGREE = 4
NO_DIR = 32      # number of independent Linear heads (k)
TILE_B = 512     # batch lanes per grid step; 512 lanes ~ 85% of HBM roofline,
                 # and double-buffered tiles (~150 KiB) fit easily in v7x's
                 # 32 MiB default scoped VMEM as well as v5e/v6e.


def _big_network_kernel(wT_ref, b_ref, x_ref, o_ref):
    """One batch tile: out(k, TILE_B) = W^T(k, 4) @ x(4, TILE_B) + b(k, 1)."""
    x = x_ref[...]                       # (in_features, TILE_B)  lane-dense
    wT = wT_ref[...]                     # (k, in_features)       resident
    b = b_ref[...]                       # (k, 1)                 resident
    k, in_features = wT.shape
    tile_b = x.shape[-1]

    # Bias broadcast once across lanes, then in_features (=4) unrolled VPU FMAs.
    # Keeps the tiny contraction off the MXU; kernel stays purely load/store bound.
    acc = jnp.broadcast_to(b, (k, tile_b)).astype(jnp.float32)
    for j in range(in_features):         # static unroll (in_features == 4)
        acc = acc + wT[:, j:j + 1] * x[j:j + 1, :]

    o_ref[...] = acc.astype(o_ref.dtype)


def big_network_forward(x, w_stacked, b_stacked, *, tile_b=TILE_B):
    """Fused forward for all k heads (lane-dense, batch-tiled).

    Args:
      x:         (batch, in_features) float32
      w_stacked: (in_features, k)     float32   (head i's weight is column i)
      b_stacked: (1, k)               float32
    Returns:
      (k, batch) float32 — head i's outputs are row i.  Split lazily at the
      consumer if the list-of-(batch, 1) API is needed (see forward_as_list).
    """
    batch, in_features = x.shape
    _, k = w_stacked.shape

    # Lane-dense layout: batch on the last (lane) dimension.
    xT = jnp.transpose(x)                # (in_features, batch)
    wT = jnp.transpose(w_stacked)        # (k, in_features)
    bT = jnp.transpose(b_stacked)        # (k, 1)

    # Pad ragged batch up to a multiple of tile_b so every store is unmasked
    # and no tile touches out-of-bounds memory (VMEM refs are unchecked).
    n_tiles = pl.cdiv(batch, tile_b)
    b_pad = n_tiles * tile_b
    if b_pad != batch:
        xT = jnp.pad(xT, ((0, 0), (0, b_pad - batch)))

    out_t = pl.pallas_call(
        _big_network_kernel,
        out_shape=jax.ShapeDtypeStruct((k, b_pad), jnp.float32),
        grid_spec=pltpu.PrefetchScalarGridSpec(
            num_scalar_prefetch=0,
            grid=(n_tiles,),
            in_specs=[
                # Resident (grid-invariant) weight and bias blocks.
                pl.BlockSpec((k, in_features), lambda i: (0, 0)),
                pl.BlockSpec((k, 1), lambda i: (0, 0)),
                # Batch-tiled, lane-dense input.
                pl.BlockSpec((in_features, tile_b), lambda i: (0, i)),
            ],
            out_specs=pl.BlockSpec((k, tile_b), lambda i: (0, i)),
        ),
        compiler_params=pltpu.CompilerParams(
            # Independent batch tiles: lets v7x shard across both TensorCores
            # (harmless on single-TC v5e/v6e) and enables DMA/compute overlap.
            dimension_semantics=("parallel",)),
    )(wT, bT, xT)

    return out_t[:, :batch]              # strip batch padding


def forward_as_list(x, w_stacked, b_stacked, *, tile_b=TILE_B):
    """API-parity helper mirroring the PyTorch module's list-of-(batch, 1) output.

    Not the hot path: a single transpose of the fused result, then cheap views.
    """
    out_t = big_network_forward(x, w_stacked, b_stacked, tile_b=tile_b)  # (k, batch)
    out = jnp.transpose(out_t)                                           # (batch, k)
    return [out[:, i:i + 1] for i in range(out.shape[1])]


def init_params(key, in_features=POLY_DEGREE, k=NO_DIR):
    """Deterministic init mimicking nn.Linear's U(-1/sqrt(in), 1/sqrt(in))."""
    kw, kb = jax.random.split(key)
    bound = 1.0 / jnp.sqrt(jnp.float32(in_features))
    w_stacked = jax.random.uniform(
        kw, (in_features, k), dtype=jnp.float32, minval=-bound, maxval=bound)
    b_stacked = jax.random.uniform(
        kb, (1, k), dtype=jnp.float32, minval=-bound, maxval=bound)
    return w_stacked, b_stacked


# TODO(synk): nn.DataParallel/.cuda() multi-GPU replication has no Pallas
# equivalent here; this implements single-device forward semantics only.

if __name__ == "__main__":
    key = jax.random.PRNGKey(0)
    k_x, k_params = jax.random.split(key)

    # batch = 1000 exercises both multi-tile pipelining (2 tiles of 512 lanes)
    # and the ragged-tail padding path; in_features / k match the module.
    batch = 1000
    x = jax.random.normal(k_x, (batch, POLY_DEGREE), dtype=jnp.float32)
    w_stacked, b_stacked = init_params(k_params)

    fused = big_network_forward(x, w_stacked, b_stacked)   # (k, batch)
    fused = jax.block_until_ready(fused)

    # Reference: plain-JAX per-head linear (same math as the PyTorch module).
    ref = x @ w_stacked + b_stacked                         # (batch, k)
    assert fused.shape == (NO_DIR, batch), fused.shape
    assert jnp.allclose(fused, ref.T, atol=1e-5), "fused output mismatch"

    # API parity with the PyTorch module (list of k (batch, 1) arrays).
    outputs = forward_as_list(x, w_stacked, b_stacked)
    outputs = jax.block_until_ready(outputs)
    assert len(outputs) == NO_DIR
    for i in (0, 7, 31):
        assert outputs[i].shape == (batch, 1), outputs[i].shape
        assert jnp.allclose(outputs[i][:, 0], ref[:, i], atol=1e-5), f"head {i} mismatch"

    print("KERNEL_OK")
</pallas_src>

<mosaic_0001>
module attributes {stable_mosaic.version = 11 : i64} {
  func.func @_big_network_kernel(%arg0: i32, %arg1: memref<32x4xf32, #tpu.memory_space<vmem>>, %arg2: memref<32x1xf32, #tpu.memory_space<vmem>>, %arg3: memref<4x512xf32, #tpu.memory_space<vmem>>, %arg4: memref<32x512xf32, #tpu.memory_space<vmem>>) attributes {dimension_semantics = [#tpu.dimension_semantics<parallel>], iteration_bounds = array<i64: 2>, scalar_prefetch = 0 : i64, scratch_operands = 0 : i64, tpu.core_type = #tpu.core_type<tc>, window_params = [{pipeline_mode = #tpu.pipeline_mode<synchronous>, transform_indices = @transform_0, window_bounds = array<i64: 32, 4>}, {pipeline_mode = #tpu.pipeline_mode<synchronous>, transform_indices = @transform_1, window_bounds = array<i64: 32, 1>}, {transform_indices = @transform_2, window_bounds = array<i64: 4, 512>}, {transform_indices = @transform_3, window_bounds = array<i64: 32, 512>}]} {
    %c0 = arith.constant 0 : index
    %c0_0 = arith.constant 0 : index
    %0 = vector.load %arg3[%c0, %c0_0] : memref<4x512xf32, #tpu.memory_space<vmem>>, vector<4x512xf32>
    %c0_1 = arith.constant 0 : index
    %c0_2 = arith.constant 0 : index
    %1 = vector.load %arg1[%c0_1, %c0_2] : memref<32x4xf32, #tpu.memory_space<vmem>>, vector<32x4xf32>
    %c0_3 = arith.constant 0 : index
    %c0_4 = arith.constant 0 : index
    %2 = vector.load %arg2[%c0_3, %c0_4] : memref<32x1xf32, #tpu.memory_space<vmem>>, vector<32x1xf32>
    %3 = vector.shape_cast %2 : vector<32x1xf32> to vector<32x1xf32>
    %4 = vector.broadcast %3 : vector<32x1xf32> to vector<32x512xf32>
    %5 = vector.extract_strided_slice %1 {offsets = [0, 0], sizes = [32, 1], strides = [1, 1]} : vector<32x4xf32> to vector<32x1xf32>
    %6 = vector.extract_strided_slice %0 {offsets = [0, 0], sizes = [1, 512], strides = [1, 1]} : vector<4x512xf32> to vector<1x512xf32>
    %7 = vector.broadcast %5 : vector<32x1xf32> to vector<32x512xf32>
    %8 = vector.broadcast %6 : vector<1x512xf32> to vector<32x512xf32>
    %9 = arith.mulf %7, %8 : vector<32x512xf32>
    %10 = arith.addf %4, %9 : vector<32x512xf32>
    %11 = vector.extract_strided_slice %1 {offsets = [0, 1], sizes = [32, 1], strides = [1, 1]} : vector<32x4xf32> to vector<32x1xf32>
    %12 = vector.extract_strided_slice %0 {offsets = [1, 0], sizes = [1, 512], strides = [1, 1]} : vector<4x512xf32> to vector<1x512xf32>
    %13 = vector.broadcast %11 : vector<32x1xf32> to vector<32x512xf32>
    %14 = vector.broadcast %12 : vector<1x512xf32> to vector<32x512xf32>
    %15 = arith.mulf %13, %14 : vector<32x512xf32>
    %16 = arith.addf %10, %15 : vector<32x512xf32>
    %17 = vector.extract_strided_slice %1 {offsets = [0, 2], sizes = [32, 1], strides = [1, 1]} : vector<32x4xf32> to vector<32x1xf32>
    %18 = vector.extract_strided_slice %0 {offsets = [2, 0], sizes = [1, 512], strides = [1, 1]} : vector<4x512xf32> to vector<1x512xf32>
    %19 = vector.broadcast %17 : vector<32x1xf32> to vector<32x512xf32>
    %20 = vector.broadcast %18 : vector<1x512xf32> to vector<32x512xf32>
    %21 = arith.mulf %19, %20 : vector<32x512xf32>
    %22 = arith.addf %16, %21 : vector<32x512xf32>
    %23 = vector.extract_strided_slice %1 {offsets = [0, 3], sizes = [32, 1], strides = [1, 1]} : vector<32x4xf32> to vector<32x1xf32>
    %24 = vector.extract_strided_slice %0 {offsets = [3, 0], sizes = [1, 512], strides = [1, 1]} : vector<4x512xf32> to vector<1x512xf32>
    %25 = vector.broadcast %23 : vector<32x1xf32> to vector<32x512xf32>
    %26 = vector.broadcast %24 : vector<1x512xf32> to vector<32x512xf32>
    %27 = arith.mulf %25, %26 : vector<32x512xf32>
    %28 = arith.addf %22, %27 : vector<32x512xf32>
    %c0_5 = arith.constant 0 : index
    %c0_6 = arith.constant 0 : index
    %29 = vector.load %arg4[%c0_5, %c0_6] : memref<32x512xf32, #tpu.memory_space<vmem>>, vector<32x512xf32>
    tpu.vector_store %arg4[%c0_5, %c0_6], %28 {strides = array<i32>} : memref<32x512xf32, #tpu.memory_space<vmem>>, vector<32x512xf32>,
    return
  }
  func.func @transform_0(%arg0: i32) -> (i32, i32) {
    %c0_i32 = arith.constant 0 : i32
    %c0_i32_0 = arith.constant 0 : i32
    %c0_i32_1 = arith.constant 0 : i32
    return %c0_i32, %c0_i32_0 : i32, i32
  }
  func.func @transform_1(%arg0: i32) -> (i32, i32) {
    %c0_i32 = arith.constant 0 : i32
    %c0_i32_0 = arith.constant 0 : i32
    %c0_i32_1 = arith.constant 0 : i32
    return %c0_i32, %c0_i32_0 : i32, i32
  }
  func.func @transform_2(%arg0: i32) -> (i32, i32) {
    %c0_i32 = arith.constant 0 : i32
    %c0_i32_0 = arith.constant 0 : i32
    return %c0_i32, %arg0 : i32, i32
  }
  func.func @transform_3(%arg0: i32) -> (i32, i32) {
    %c0_i32 = arith.constant 0 : i32
    %c0_i32_0 = arith.constant 0 : i32
    return %c0_i32, %arg0 : i32, i32
  }
}

</mosaic_0001>

<bundles_post_ra>
// kernel: tpu_custom_call.1
= control target key start
LH: loop header
LB: loop body
LE: loop exit
PB: predicated region body
PF: predicated region fallthrough
CT: control target
= control target key end

     0   :  { %8 = vsyncpa [#allocation3], 0  ;;  %s1040_s0 = inlined_call_operand.vmem [shape: f32[32,4], index: 0, kind: input, shape index: {}]   ;;  %s1041_s1 = inlined_call_operand.vmem [shape: f32[32,1], index: 1, kind: input, shape index: {}]   ;;  %s1042_s2 = inlined_call_operand.vmem [shape: f32[4,1024], index: 2, kind: input, shape index: {}]   ;;  %s1043_s3 = inlined_call_operand.hbm [shape: f32[32,1024], index: 3, kind: output, shape index: {}]  }
   0x1   :  { %10 = vsyncpa [#allocation3 + $0x1], 0  ;;  %s795_s12 = smov 0   ;;  %s797_s13 = smov 0  }
   0x2   :  { %s799_s14 = smov 0   ;;  %s801_s15 = smov 0  }
   0x3 LB: > { %s816_s16 = sadd.s32 4294967295, %s765_s15   ;;  %s636_s17 = sadd.s32 4294967294, %s765_s15   ;;  %s765_s15 = sphi %s801_s15, %s1049_s15   ;;  %s761_s14 = sphi %s799_s14, %s1048_s14   ;;  %s757_s13 = sphi %s797_s13, %s1047_s13   ;;  %s753_s12 = sphi %s795_s12, %s1046_s12  }
   0x4   : > { %s820_s18 = sadd.s32 1, %s765_s15   ;;  %s91_s19 = sadd.s32 1, %s761_s14 }
   0x5   : > { %s88_s20 = ssub.s32 %s765_s15, %s820_s18  ;;  %p101_p0 = scmp.ne.s32.totalorder %s761_s14, %s757_s13 }
   0x6   : > { %p89_p1 = scmp.eq.s32.totalorder %s88_s20, 0  ;;  %p102_p2 = scmp.eq.s32.totalorder %s816_s16, 1 }
   0x7   : > { %p107_p3 = scmp.ne.s32.totalorder %s757_s13, %s753_s12  ;;  %p108_p4 = scmp.eq.s32.totalorder %s636_s17, 1 }
   0x8   : > { %s831_s21 = scalar_select %p89_p1, %s761_s14, %s91_s19  }
   0x9   : > { %p833_p5 = por %p102_p2, %p101_p0  ;;  %p837_p6 = por %p108_p4, %p107_p3 }
   0xa   : > { %p639_p7 = scmp.ge.s32.totalorder %s765_s15, 1  ;;  %p141_p8 = scmp.lt.s32.totalorder %s765_s15, 3 }
   0xc   : > { %p142_p9 = pnand %p639_p7, %p141_p8 }
   0xd   : > { %v176_v0 = vld [vmem:[%s1040_s0 + $0x10] sm:$0xff] (!%p142_p9)  ;;  %v174_v1 = vld [vmem:[%s1040_s0] sm:$0xff] (!%p142_p9)  ;;  %v767_v2 = vmov (!%p142_p9), 0   ;;  %v177_v3 = vld [vmem:[%s1040_s0 + $0x18] sm:$0xff] (!%p142_p9)  ;;  %v768_v9 = vmov (!%p142_p9), 1   ;;  %v769_v10 = vmov (!%p142_p9), 2   ;;  %v224_v12 = vlaneseq (!%p142_p9) }
   0xe   : > { %145 = sbr.rel (%p142_p9) target bundleno = 207 (0xcf), region = 32  ;;  %696 = vset.pattern.permute.xlu1 (!%p142_p9), %v767_v2  ;;  %695 = vset.pattern.permute.xlu0 (!%p142_p9), %v767_v2  ;;  %v175_v4 = vld [vmem:[%s1040_s0 + $0x8] sm:$0xff] (!%p142_p9)  ;;  %v178_v6 = vld [vmem:[%s1041_s1] sm:$0xff] (!%p142_p9)  ;;  %v181_v7 = vld [vmem:[%s1041_s1 + $0x18] sm:$0xff] (!%p142_p9)  ;;  %v770_v11 = vmov (!%p142_p9), 3   ;;  %s641_s19 = sshll.u32 (!%p142_p9), %s816_s16, 2 }
   0xf   : > { %214 = vperm.xlu1 (!%p142_p9), %696, %v176_v0   ;;  %204 = vperm.xlu0 (!%p142_p9), %695, %v174_v1   ;;  %v179_v5 = vld [vmem:[%s1041_s1 + $0x8] sm:$0xff] (!%p142_p9)  ;;  %v180_v8 = vld [vmem:[%s1041_s1 + $0x10] sm:$0xff] (!%p142_p9)  ;;  %p166_p10 = scmp.lt.s32.totalorder (!%p142_p9), %s641_s19, 7  ;;  %v225_v13 = vshrl.u32 (!%p142_p9), %v224_v12, 7  ;;  %s162_s27 = sand.u32 (!%p142_p9), 1, %s757_s13  }
  0x10   : > { %s640_s28 = sshll.u32 (!%p142_p9), %s162_s27, 7  ;;  %s648_s30 = sshll.u32 (!%p142_p9), %s816_s16, 9 }
  0x11   : > { %v226_v16 = vsub.s32 (!%p142_p9), 0, %v225_v13  ;;  %v230_v17 = vsub.s32 (!%p142_p9), 4, %v225_v13  ;;  %v310_v20 = vsub.s32 (!%p142_p9), 1, %v225_v13  ;;  %v314_v21 = vsub.s32 (!%p142_p9), 5, %v225_v13  ;;  %s946_s29 = scalar_lea.vmem (!%p142_p9), [#allocation2], %s640_s28  ;;  %s989_s6 = scalar_lea.hbm (!%p142_p9), %s1043_s3, %s648_s30 }
  0x12   : > { %v394_v24 = vsub.s32 (!%p142_p9), 2, %v225_v13  ;;  %v398_v25 = vsub.s32 (!%p142_p9), 6, %v225_v13  ;;  %v478_v26 = vsub.s32 (!%p142_p9), 3, %v225_v13  ;;  %v482_v27 = vsub.s32 (!%p142_p9), 7, %v225_v13  ;;  %s574_s4 = sshll.u32 (!%p142_p9), %s946_s29, 4  ;;  %s999_s7 = scalar_lea.sflag (!%p142_p9), [#allocation3], %s162_s27  ;;  %s991_s4 = int_to_ptr.vmem [resolvable:$true] %s574_s4 }
  0x13   : > { %219 = vperm.xlu1 (!%p142_p9), %696, %v177_v3   ;;  %209 = vperm.xlu0 (!%p142_p9), %695, %v175_v4   ;;  %s703_s8 = scalar_lea.vmem (!%p142_p9), %s991_s4, 2048  ;;  %s771_s9 = smov (!%p142_p9), [#allocation2]  }
  0x14   : > { %p704_p11 = scmp.ne.s32.totalorder (!%p142_p9), %s991_s4, %s703_s8  ;;  %s707_s10 = sshll.u32 (!%p142_p9), %s771_s9, 4  ;;  %s708_s10 = int_to_ptr.vmem [resolvable:$false] %s707_s10 }
  0x15   : > { %s1051_s19 = smov (!%p166_p10, %s641_s19), 7  ;;  %s709_s11 = scalar_lea.vmem %s708_s10, 4096 }
  0x16   : > { %s642_s20 = sshll.u32 %s1051_s19, 2  ;;  %p705_p12 = pnand %p704_p11, %p833_p5 }
  0x17   : > { %189 = vperm.xlu1 %696, %v179_v5   ;;  %184 = vperm.xlu0 %695, %v178_v6   ;;  %s169_s26 = scalar_lea.vmem %s1042_s2, %s642_s20  ;;  %p710_p0 = scmp.lt.s32.totalorder %s991_s4, %s708_s10 }
  0x18   : > { %v172_v18 = vld [vmem:[%s169_s26] sm:$0xff]  ;;  %v173_v19 = vld [vmem:[%s169_s26 + $0x8] sm:$0xff]  ;;  %p706_p13 = pneg %p705_p12  ;;  %p711_p1 = scmp.lt.s32.totalorder %s709_s11, %s703_s8 }
  0x19   : > { %v227_v28 = vrot.slane %v172_v18, %v226_v16  ;;  %v231_v29 = vrot.slane %v172_v18, %v230_v17  ;;  %v235_v30 = vrot.slane %v173_v19, %v226_v16  ;;  %v239_v31 = vrot.slane %v173_v19, %v230_v17 }
  0x1a   : > { %v311_v32 = vrot.slane %v172_v18, %v310_v20  ;;  %v315_v33 = vrot.slane %v172_v18, %v314_v21  ;;  %v319_v34 = vrot.slane %v173_v19, %v310_v20  ;;  %v323_v35 = vrot.slane %v173_v19, %v314_v21  ;;  %p712_p2 = por %p711_p1, %p710_p0 }
  0x1b   : > { %199 = vperm.xlu1 %696, %v181_v7   ;;  %194 = vperm.xlu0 %695, %v180_v8   ;;  %v395_v38 = vrot.slane %v172_v18, %v394_v24  ;;  %v399_v39 = vrot.slane %v172_v18, %v398_v25  ;;  %v403_v40 = vrot.slane %v173_v19, %v394_v24 }
  0x1c   : > { %v407_v41 = vrot.slane %v173_v19, %v398_v25  ;;  %v479_v42 = vrot.slane %v172_v18, %v478_v26  ;;  %v483_v43 = vrot.slane %v172_v18, %v482_v27  ;;  %v487_v44 = vrot.slane %v173_v19, %v478_v26  ;;  %p713_p3 = pnand %p712_p2, %p706_p13 }
  0x1d   : > { %v491_v45 = vrot.slane %v173_v19, %v482_v27  ;;  %v247_v46 = vrot.slane %v227_v28, %v226_v16  ;;  %v251_v47 = vrot.slane %v231_v29, %v226_v16  ;;  %v255_v48 = vrot.slane %v235_v30, %v226_v16 }
  0x1e   : > { %v259_v49 = vrot.slane %v239_v31, %v226_v16  ;;  %v871_v50 = vrot.slane %v311_v32, %v310_v20  ;;  %v873_v51 = vrot.slane %v315_v33, %v310_v20  ;;  %v875_v52 = vrot.slane %v319_v34, %v310_v20 }
  0x1f   : > { %698 = vset.pattern.permute.xlu1 %v768_v9  ;;  %697 = vset.pattern.permute.xlu0 %v768_v9  ;;  %v877_v53 = vrot.slane %v323_v35, %v310_v20  ;;  %v879_v56 = vrot.slane %v395_v38, %v394_v24  ;;  %v881_v57 = vrot.slane %v399_v39, %v394_v24 }
  0x20   : > { %297 = vperm.xlu1 %698, %v175_v4   ;;  %293 = vperm.xlu0 %697, %v174_v1   ;;  %v883_v58 = vrot.slane %v403_v40, %v394_v24  ;;  %v885_v59 = vrot.slane %v407_v41, %v394_v24  ;;  %v887_v60 = vrot.slane %v479_v42, %v478_v26 }
  0x21   : > { %v889_v61 = vrot.slane %v483_v43, %v478_v26  ;;  %v891_v62 = vrot.slane %v487_v44, %v478_v26  ;;  %v893_v63 = vrot.slane %v491_v45, %v478_v26 }
  0x24   : > { %301 = vperm.xlu1 %698, %v176_v0   ;;  %305 = vperm.xlu0 %697, %v177_v3  }
  0x28   : > { %699 = vset.pattern.permute.xlu1 %v769_v10  ;;  %700 = vset.pattern.permute.xlu0 %v769_v10 }
  0x29   : > { %377 = vperm.xlu1 %699, %v174_v1   ;;  %381 = vperm.xlu0 %700, %v175_v4  }
  0x2d   : > { %385 = vperm.xlu1 %699, %v176_v0   ;;  %701 = vset.pattern.permute.xlu0 %v770_v11 }
  0x2e   : > { %461 = vperm.xlu0 %701, %v174_v1  }
  0x31   : > { %389 = vperm.xlu1 %699, %v177_v3  }
  0x32   : > { %473 = vperm.xlu0 %701, %v177_v3  }
  0x35   : > { %702 = vset.pattern.permute.xlu1 %v770_v11 }
  0x36   : > { %465 = vperm.xlu1 %702, %v175_v4  }
  0x3a   : > { %469 = vperm.xlu1 %702, %v176_v0  }
  0x8e   : > { %v215_v14 = vpop.permute.xlu1 %214  ;;  %v205_v15 = vpop.permute.xlu0 %204 }
  0x8f   : > { %v260_v4 = vmul.f32 %v247_v46, %v205_v15  ;;  %v261_v5 = vmul.f32 %v251_v47, %v205_v15  ;;  %v262_v6 = vmul.f32 %v255_v48, %v205_v15  ;;  %v263_v7 = vmul.f32 %v259_v49, %v205_v15 }
  0x90   : > { %v268_v8 = vmul.f32 %v247_v46, %v215_v14  ;;  %v269_v9 = vmul.f32 %v251_v47, %v215_v14  ;;  %v270_v10 = vmul.f32 %v255_v48, %v215_v14  ;;  %v271_v11 = vmul.f32 %v259_v49, %v215_v14 }
  0x92   : > { %v220_v22 = vpop.permute.xlu1 %219  ;;  %v210_v23 = vpop.permute.xlu0 %209 }
  0x93   : > { %v264_v0 = vmul.f32 %v247_v46, %v210_v23  ;;  %v265_v1 = vmul.f32 %v251_v47, %v210_v23  ;;  %v266_v2 = vmul.f32 %v255_v48, %v210_v23  ;;  %v267_v3 = vmul.f32 %v259_v49, %v210_v23 }
  0x94   : > { %v272_v12 = vmul.f32 %v247_v46, %v220_v22  ;;  %v273_v13 = vmul.f32 %v251_v47, %v220_v22  ;;  %v274_v16 = vmul.f32 %v255_v48, %v220_v22  ;;  %v275_v17 = vmul.f32 %v259_v49, %v220_v22 }
  0x96   : > { %v190_v36 = vpop.permute.xlu1 %189  ;;  %v185_v37 = vpop.permute.xlu0 %184 }
  0x97   : > { %v280_v20 = vadd.f32 %v264_v0, %v190_v36  ;;  %v281_v21 = vadd.f32 %v265_v1, %v190_v36  ;;  %v282_v24 = vadd.f32 %v266_v2, %v190_v36  ;;  %v283_v25 = vadd.f32 %v267_v3, %v190_v36 }
  0x98   : > { %v276_v26 = vadd.f32 %v260_v4, %v185_v37  ;;  %v277_v23 = vadd.f32 %v261_v5, %v185_v37  ;;  %v278_v27 = vadd.f32 %v262_v6, %v185_v37  ;;  %v279_v28 = vadd.f32 %v263_v7, %v185_v37 }
  0x9a   : > { %v200_v54 = vpop.permute.xlu1 %199  ;;  %v195_v55 = vpop.permute.xlu0 %194 }
  0x9b   : > { %v288_v36 = vadd.f32 %v272_v12, %v200_v54  ;;  %v289_v37 = vadd.f32 %v273_v13, %v200_v54  ;;  %v290_v38 = vadd.f32 %v274_v16, %v200_v54  ;;  %v291_v39 = vadd.f32 %v275_v17, %v200_v54 }
  0x9c   : > { %v903_v40 = vadd.f32 %v268_v8, %v195_v55  ;;  %v905_v41 = vadd.f32 %v269_v9, %v195_v55  ;;  %v907_v42 = vadd.f32 %v270_v10, %v195_v55  ;;  %v909_v43 = vadd.f32 %v271_v11, %v195_v55 }
  0x9f   : > { %v298_v18 = vpop.permute.xlu1 %297  ;;  %v294_v19 = vpop.permute.xlu0 %293 }
  0xa0   : > { %v348_v15 = vmul.f32 %v871_v50, %v298_v18  ;;  %v349_v29 = vmul.f32 %v873_v51, %v298_v18  ;;  %v350_v14 = vmul.f32 %v875_v52, %v298_v18  ;;  %v351_v30 = vmul.f32 %v877_v53, %v298_v18 }
  0xa1   : > { %v344_v22 = vmul.f32 %v871_v50, %v294_v19  ;;  %v345_v31 = vmul.f32 %v873_v51, %v294_v19  ;;  %v346_v32 = vmul.f32 %v875_v52, %v294_v19  ;;  %v347_v33 = vmul.f32 %v877_v53, %v294_v19 }
  0xa2   : > { %v364_v44 = vadd.f32 %v348_v15, %v280_v20  ;;  %v365_v45 = vadd.f32 %v349_v29, %v281_v21  ;;  %v366_v46 = vadd.f32 %v350_v14, %v282_v24  ;;  %v367_v47 = vadd.f32 %v351_v30, %v283_v25 }
  0xa3   : > { %v302_v34 = vpop.permute.xlu1 %301  ;;  %v306_v35 = vpop.permute.xlu0 %305  ;;  %v360_v48 = vadd.f32 %v344_v22, %v276_v26  ;;  %v361_v49 = vadd.f32 %v345_v31, %v277_v23  ;;  %v362_v0 = vadd.f32 %v346_v32, %v278_v27  ;;  %v363_v1 = vadd.f32 %v347_v33, %v279_v28 }
  0xa4   : > { %v356_v2 = vmul.f32 %v871_v50, %v306_v35  ;;  %v357_v54 = vmul.f32 %v873_v51, %v306_v35  ;;  %v358_v3 = vmul.f32 %v875_v52, %v306_v35  ;;  %v359_v4 = vmul.f32 %v877_v53, %v306_v35 }
  0xa5   : > { %v921_v10 = vmul.f32 %v871_v50, %v302_v34  ;;  %v924_v11 = vmul.f32 %v873_v51, %v302_v34  ;;  %v927_v12 = vmul.f32 %v875_v52, %v302_v34  ;;  %v930_v13 = vmul.f32 %v877_v53, %v302_v34 }
  0xa6   : > { %v372_v20 = vadd.f32 %v356_v2, %v288_v36  ;;  %v373_v50 = vadd.f32 %v357_v54, %v289_v37  ;;  %v374_v21 = vadd.f32 %v358_v3, %v290_v38  ;;  %v375_v24 = vadd.f32 %v359_v4, %v291_v39 }
  0xa8   : > { %v378_v5 = vpop.permute.xlu1 %377  ;;  %v382_v55 = vpop.permute.xlu0 %381 }
  0xa9   : > { %v428_v6 = vmul.f32 %v879_v56, %v378_v5  ;;  %v429_v7 = vmul.f32 %v881_v57, %v378_v5  ;;  %v430_v8 = vmul.f32 %v883_v58, %v378_v5  ;;  %v431_v9 = vmul.f32 %v885_v59, %v378_v5 }
  0xaa   : > { %v432_v16 = vmul.f32 %v879_v56, %v382_v55  ;;  %v433_v17 = vmul.f32 %v881_v57, %v382_v55  ;;  %v434_v18 = vmul.f32 %v883_v58, %v382_v55  ;;  %v435_v19 = vmul.f32 %v885_v59, %v382_v55 }
  0xab   : > { %v444_v52 = vadd.f32 %v428_v6, %v360_v48  ;;  %v445_v25 = vadd.f32 %v429_v7, %v361_v49  ;;  %v446_v26 = vadd.f32 %v430_v8, %v362_v0  ;;  %v447_v53 = vadd.f32 %v431_v9, %v363_v1 }
  0xac   : > { %v386_v51 = vpop.permute.xlu1 %385  ;;  %v448_v14 = vadd.f32 %v432_v16, %v364_v44  ;;  %v449_v30 = vadd.f32 %v433_v17, %v365_v45  ;;  %v450_v22 = vadd.f32 %v434_v18, %v366_v46  ;;  %v451_v31 = vadd.f32 %v435_v19, %v367_v47 }
  0xad   : > { %v462_v23 = vpop.permute.xlu0 %461  ;;  %v436_v3 = vmul.f32 %v879_v56, %v386_v51  ;;  %v437_v4 = vmul.f32 %v881_v57, %v386_v51  ;;  %v438_v5 = vmul.f32 %v883_v58, %v386_v51  ;;  %v439_v55 = vmul.f32 %v885_v59, %v386_v51 }
  0xae   : > { %v512_v27 = vmul.f32 %v887_v60, %v462_v23  ;;  %v513_v28 = vmul.f32 %v889_v61, %v462_v23  ;;  %v514_v15 = vmul.f32 %v891_v62, %v462_v23  ;;  %v515_v29 = vmul.f32 %v893_v63, %v462_v23 }
  0xaf   : > { %v369_v18 = vadd.f32 %v924_v11, %v905_v41  ;;  %v370_v19 = vadd.f32 %v927_v12, %v907_v42 }
  0xb0   : > { %v528_v32 = vadd.f32 %v512_v27, %v444_v52  ;;  %v529_v33 = vadd.f32 %v513_v28, %v445_v25  ;;  %v530_v34 = vadd.f32 %v514_v15, %v446_v26  ;;  %v531_v35 = vadd.f32 %v515_v29, %v447_v53  ;;  %v390_v36 = vpop.permute.xlu1 %389 }
  0xb1   : > { %v440_v37 = vmul.f32 %v879_v56, %v390_v36  ;;  %v441_v38 = vmul.f32 %v881_v57, %v390_v36  ;;  %v442_v39 = vmul.f32 %v883_v58, %v390_v36  ;;  %v443_v48 = vmul.f32 %v885_v59, %v390_v36  ;;  %v474_v49 = vpop.permute.xlu0 %473 }
  0xb2   : > { %544 = vst [vmem:[%s946_s29] sm:$0xff] %v528_v32  ;;  %545 = vst [vmem:[%s946_s29 + $0x8] sm:$0xff] %v529_v33  ;;  %v524_v44 = vmul.f32 %v887_v60, %v474_v49  ;;  %v525_v45 = vmul.f32 %v889_v61, %v474_v49  ;;  %v526_v46 = vmul.f32 %v891_v62, %v474_v49 }
  0xb3   : > { %546 = vst [vmem:[%s946_s29 + $0x10] sm:$0xff] %v530_v34  ;;  %547 = vst [vmem:[%s946_s29 + $0x18] sm:$0xff] %v531_v35  ;;  %v527_v47 = vmul.f32 %v893_v63, %v474_v49  ;;  %v456_v0 = vadd.f32 %v440_v37, %v372_v20  ;;  %v457_v1 = vadd.f32 %v441_v38, %v373_v50 }
  0xb4   : > { %v458_v2 = vadd.f32 %v442_v39, %v374_v21  ;;  %v459_v54 = vadd.f32 %v443_v48, %v375_v24  ;;  %v368_v59 = vadd.f32 %v921_v10, %v903_v40  ;;  %v371_v20 = vadd.f32 %v930_v13, %v909_v43 }
  0xb5   : > { %v540_v6 = vadd.f32 %v524_v44, %v456_v0  ;;  %v541_v7 = vadd.f32 %v525_v45, %v457_v1  ;;  %v466_v16 = vpop.permute.xlu1 %465  ;;  %v453_v42 = vadd.f32 %v437_v4, %v369_v18  ;;  %v454_v12 = vadd.f32 %v438_v5, %v370_v19 }
  0xb6   : > { %v542_v8 = vadd.f32 %v526_v46, %v458_v2  ;;  %v543_v9 = vadd.f32 %v527_v47, %v459_v54  ;;  %v516_v17 = vmul.f32 %v887_v60, %v466_v16  ;;  %v517_v56 = vmul.f32 %v889_v61, %v466_v16 }
  0xb7   : > { %v518_v57 = vmul.f32 %v891_v62, %v466_v16  ;;  %v519_v58 = vmul.f32 %v893_v63, %v466_v16  ;;  %556 = vst [vmem:[%s946_s29 + $0x60] sm:$0xff] %v540_v6  ;;  %557 = vst [vmem:[%s946_s29 + $0x68] sm:$0xff] %v541_v7  ;;  %v452_v11 = vadd.f32 %v436_v3, %v368_v59 }
  0xb8   : > { %558 = vst [vmem:[%s946_s29 + $0x70] sm:$0xff] %v542_v8  ;;  %559 = vst [vmem:[%s946_s29 + $0x78] sm:$0xff] %v543_v9  ;;  %v532_v50 = vadd.f32 %v516_v17, %v448_v14  ;;  %v533_v40 = vadd.f32 %v517_v56, %v449_v30  ;;  %v455_v43 = vadd.f32 %v439_v55, %v371_v20 }
  0xb9   : > { %v534_v10 = vadd.f32 %v518_v57, %v450_v22  ;;  %v535_v21 = vadd.f32 %v519_v58, %v451_v31  ;;  %v470_v41 = vpop.permute.xlu1 %469 }
  0xba   : > { %548 = vst [vmem:[%s946_s29 + $0x20] sm:$0xff] %v532_v50  ;;  %549 = vst [vmem:[%s946_s29 + $0x28] sm:$0xff] %v533_v40  ;;  %v520_v13 = vmul.f32 %v887_v60, %v470_v41  ;;  %v521_v24 = vmul.f32 %v889_v61, %v470_v41  ;;  %v522_v51 = vmul.f32 %v891_v62, %v470_v41 }
  0xbb   : > { %550 = vst [vmem:[%s946_s29 + $0x30] sm:$0xff] %v534_v10  ;;  %551 = vst [vmem:[%s946_s29 + $0x38] sm:$0xff] %v535_v21  ;;  %v523_v52 = vmul.f32 %v893_v63, %v470_v41 }
  0xbc   : > { %v536_v25 = vadd.f32 %v520_v13, %v452_v11  ;;  %v537_v26 = vadd.f32 %v521_v24, %v453_v42  ;;  %v538_v60 = vadd.f32 %v522_v51, %v454_v12 }
  0xbd   : > { %v539_v53 = vadd.f32 %v523_v52, %v455_v43 }
  0xbe   : > { %552 = vst [vmem:[%s946_s29 + $0x40] sm:$0xff] %v536_v25  ;;  %553 = vst [vmem:[%s946_s29 + $0x48] sm:$0xff] %v537_v26 }
  0xbf   : > { %554 = vst [vmem:[%s946_s29 + $0x50] sm:$0xff] %v538_v60  ;;  %555 = vst [vmem:[%s946_s29 + $0x58] sm:$0xff] %v539_v53 }
  0xc0   : > { %716 = shalt.err (!%p713_p3)
}
  0xc1   : > { %s717_s17 = scalar_lea.hbm %s989_s6, 2048  ;;  %s721_s24 = scalar_lea.hbm %s1043_s3, 4096 }
  0xc2   : > { %p718_p4 = scmp.ne.s32.totalorder %s989_s6, %s717_s17  ;;  %p722_p9 = scmp.lt.u32.totalorder %s989_s6, %s1043_s3 }
  0xc3   : > { %p723_p10 = scmp.lt.u32.totalorder %s721_s24, %s717_s17  ;;  %p725_p12 = scmp.lt.u32.totalorder %s717_s17, %s989_s6 }
  0xc4   : > { %p719_p7 = pnand %p718_p4, %p833_p5 }
  0xc5   : > { %p724_p11 = por %p723_p10, %p722_p9 }
  0xc6   : > { %p720_p8 = pneg %p719_p7 }
  0xc7   : > { %p726_p13 = por %p725_p12, %p724_p11 }
  0xc9   : > { %p727_p0 = pnand %p726_p13, %p720_p8 }
  0xcb   : > { %730 = shalt.err (!%p727_p0)
}
  0xcc   : > { %s772_s27 = smov 512   ;;  %s773_s28 = smov 1024  }
  0xcd   : > { %s774_s29 = smov 32  }
  0xce   : > { %649 = dma.vmem_to_hbm [thread:$0]  (%p833_p5), %s991_s4, 2048, %s989_s6, %s999_s7, %s772_s27, %s773_s28, %s774_s29  }
  0xcf PF: > { %p655_p1 = scmp.ge.s32.totalorder %s765_s15, 2  ;;  %s589_s30 = sand.u32 1, %s753_s12  }
  0xd0   : > { %s590_s16 = scalar_lea.sflag [#allocation3], %s589_s30 }
  0xd1   : > { %p652_p2 = pnand %p655_p1, %p837_p6 }
  0xd3   : > { %748 = dma.done.wait (!%p652_p2), %s590_s16, 2048  }
  0xd4   : > { %750 = vsyncadd (!%p652_p2), %s590_s16, 4294965248  ;;  %p13_p3 = scmp.ge.s32.totalorder %s820_s18, 4   ;;  %s1046_s12 = smov %s757_s13 }
  0xd5   : > { %s1047_s13 = smov %s761_s14  ;;  %s1048_s14 = smov %s831_s21 }
  0xd6   : > { %s1049_s15 = smov %s820_s18  ;;  %15 = sbr.rel (!%p13_p3) target bundleno = 3 (0x3), region = 67 }
  0xdd   :  { %595 = vsyncpa [#allocation3], 1 }
  0xde   :  { %597 = vsyncpa [#allocation3 + $0x1], 1 }

</bundles_post_ra>
